<compile_context>
chip_gen: v7x
topology: tpu7x:2x2x1
jax: 0.10.0
libtpu: 0.0.40
codegen_flags: <defaults>
</compile_context>

<pallas_src>
import functools

import jax
import jax.numpy as jnp
from jax.experimental import pallas as pl
from jax.experimental.pallas import tpu as pltpu


def _agfl_kernel(w_ref, s_ref, t_ref, out_ref, *, hw, hw_tile, n_inner,
                 per_channel, needs_mask):
    """One (batch, hw_outer, hw_inner) step of the weighted squared-error sum.

    w_ref  : (1, A, hw_tile)    normalized attention (feature dtype); squared here
    s_ref  : (1, C, hw_tile)    student features (native dtype)
    t_ref  : (1, C, hw_tile)    teacher features (native dtype)
    out_ref: (1, 1, 1, hw_tile) lane-wise partial sums, resident across hw_inner
    """
    ho = pl.program_id(1)
    hi = pl.program_id(2)

    @pl.when(hi == 0)
    def _():
        out_ref[...] = jnp.zeros_like(out_ref)

    s = s_ref[0].astype(jnp.float32)          # (C, hw_tile)
    t = t_ref[0].astype(jnp.float32)          # (C, hw_tile)
    a = w_ref[0].astype(jnp.float32)          # (A, hw_tile)
    w = a * a                                 # square in-kernel (free on VPU)

    d = s - t
    e = d * d                                 # (C, hw_tile)
    if per_channel:
        # Per-channel attention: weight before the channel reduction.
        contrib = jnp.sum(e * w, axis=0, keepdims=True)          # (1, hw_tile)
    else:
        # Single attention channel: factor a^2 out of the channel sum.
        contrib = jnp.sum(e, axis=0, keepdims=True) * w          # (1, hw_tile)
    contrib = contrib.reshape(1, 1, 1, hw_tile)

    if needs_mask:
        gtile = ho * n_inner + hi
        is_full = (gtile + 1) * hw_tile <= hw

        @pl.when(is_full)
        def _():
            out_ref[...] += contrib

        @pl.when(jnp.logical_not(is_full))
        def _():
            # Partial trailing tile or duplicate (clamped) tile: zero the lanes
            # past the true spatial extent.  Garbage stays lane-local, so
            # masking after the channel sum is correct.
            lane = jax.lax.broadcasted_iota(jnp.int32, (1, 1, 1, hw_tile), 3)
            lane = lane + gtile * hw_tile
            out_ref[...] += jnp.where(lane < hw, contrib, 0.0)
    else:
        out_ref[...] += contrib


def _sublane_rows(n, itemsize):
    """Rows after sublane packing/padding for a given element size."""
    pack = {1: 32, 2: 16, 4: 8}.get(itemsize, 8)
    return -(-n // pack) * pack


def _default_vmem_budget_bytes():
    """Target total double-buffered VMEM footprint, by TPU generation."""
    try:
        kind = jax.devices()[0].device_kind.lower()
    except Exception:  # pragma: no cover - defensive; budget is perf-only
        kind = ""
    if "v5e" in kind or "v5 lite" in kind or "v5lite" in kind:
        return 24 << 20     # v5e: ~2-4 MiB tiles already saturate ~0.8 TB/s
    if "v6" in kind:
        return 48 << 20     # v6e: 128 MiB physical; push toward HBM roofline
    return 40 << 20         # v7x (64 MiB physical) or unknown: leave headroom


def attention_guided_feature_loss(student_feat, teacher_feat, teacher_attn,
                                  loss_weight=1.0, reduction="mean",
                                  vmem_budget_bytes=None):
    """JAX wrapper reproducing AttentionGuidedFeatureLoss.forward (MSELoss).

    student_feat : (B, C, Hs, Ws)
    teacher_feat : (B, C, H, W)
    teacher_attn : (B, A, Ha, Wa) with A == 1 or A == C (5-D maps collapsed)
    """
    B, C, H, W = teacher_feat.shape

    # ---- _process_attention glue (tiny; plain JAX, off the hot path) ----
    attn = teacher_attn.astype(jnp.float32)
    if attn.ndim > teacher_feat.ndim:
        # TODO(synk): torch keeps the extra axis (keepdim=True), which would
        # then break F.interpolate; we collapse it so the 4-D path is valid.
        if attn.shape[1] > 1:
            attn = jnp.mean(attn, axis=1)
        else:
            attn = jnp.squeeze(attn, axis=1)
    if attn.ndim != 4:
        raise NotImplementedError("attention map must be 4-D (or collapsible 5-D)")
    if attn.shape[-2:] != (H, W):
        # F.interpolate(mode='bilinear', align_corners=False) ~ half-pixel
        # centered linear resize.
        attn = jax.image.resize(attn, (*attn.shape[:-2], H, W), method="linear")
    amin = jnp.min(attn, axis=(-2, -1), keepdims=True)
    amax = jnp.max(attn, axis=(-2, -1), keepdims=True)
    attn_norm = (attn - amin) / (amax - amin + 1e-6)

    if student_feat.shape[2:] != (H, W):
        student_feat = jax.image.resize(
            student_feat, (*student_feat.shape[:2], H, W), method="linear")

    A = attn_norm.shape[1]
    if A not in (1, C):
        raise NotImplementedError(
            "attention channel count must be 1 or match feature channels")
    per_channel = (A == C) and (C != 1)

    # ---- streaming layout: spatial dims on the lane axis, native dtypes ----
    HW = H * W
    s = student_feat.reshape(B, C, HW)
    t = teacher_feat.reshape(B, C, HW)
    # Stream the attention in the feature dtype (bf16 when features are bf16)
    # and square it inside the kernel: no separate f32 weight array in HBM.
    stream_dtype = jnp.promote_types(s.dtype, t.dtype)
    if jnp.dtype(stream_dtype).itemsize >= 4:
        stream_dtype = jnp.float32
    w = attn_norm.reshape(B, A, HW).astype(stream_dtype)

    # ---- VMEM accounting: 2 feature tiles + attention tile (sublane padded),
    #      double buffered, plus the resident output block. ----
    s_item = jnp.dtype(s.dtype).itemsize
    t_item = jnp.dtype(t.dtype).itemsize
    w_item = jnp.dtype(w.dtype).itemsize
    bytes_per_lane = 2 * (_sublane_rows(C, s_item) * s_item
                          + _sublane_rows(C, t_item) * t_item
                          + _sublane_rows(A, w_item) * w_item)
    bytes_per_lane += 2 * 8 * 4                # (1,1,1,hw_tile) f32 out block
    if vmem_budget_bytes is None:
        vmem_budget_bytes = _default_vmem_budget_bytes()
    max_lanes = max(128, (int(vmem_budget_bytes) // bytes_per_lane) // 128 * 128)
    hw_tile = HW if HW <= max_lanes else max_lanes
    footprint = bytes_per_lane * hw_tile
    vmem_limit = int(min(max(2 * footprint + (4 << 20), 32 << 20), 56 << 20))

    # ---- grid: batch x hw_outer (both parallel -> feeds both v7x TCs even at
    #      B == 1) x hw_inner (reduction axis, last). ----
    n_hw = pl.cdiv(HW, hw_tile)
    n_outer = 2 if n_hw >= 2 else 1
    n_inner = pl.cdiv(n_hw, n_outer)
    needs_mask = (n_outer * n_inner * hw_tile != HW)

    if n_outer * n_inner > n_hw:
        # Ragged split: the one duplicate trailing tile is clamped onto the
        # last real block; the kernel masks its contribution to zero.
        def _in_map(b, ho, hi):
            return (b, 0, jnp.minimum(ho * n_inner + hi, n_hw - 1))
    else:
        def _in_map(b, ho, hi):
            return (b, 0, ho * n_inner + hi)

    kernel = functools.partial(_agfl_kernel, hw=HW, hw_tile=hw_tile,
                               n_inner=n_inner, per_channel=per_channel,
                               needs_mask=needs_mask)

    cost = pl.CostEstimate(
        flops=int(5 * B * C * HW + B * A * HW),
        transcendentals=0,
        bytes_accessed=int(B * C * HW * (s_item + t_item)
                           + B * A * HW * w_item
                           + B * n_outer * hw_tile * 4))

    partial_sums = pl.pallas_call(
        kernel,
        out_shape=jax.ShapeDtypeStruct((B, n_outer, 1, hw_tile), jnp.float32),
        grid_spec=pltpu.PrefetchScalarGridSpec(
            num_scalar_prefetch=0,
            grid=(B, n_outer, n_inner),
            in_specs=[
                pl.BlockSpec((1, A, hw_tile), _in_map),
                pl.BlockSpec((1, C, hw_tile), _in_map),
                pl.BlockSpec((1, C, hw_tile), _in_map),
            ],
            out_specs=pl.BlockSpec((1, 1, 1, hw_tile),
                                   lambda b, ho, hi: (b, ho, 0, 0)),
        ),
        compiler_params=pltpu.CompilerParams(
            dimension_semantics=("parallel", "parallel", "arbitrary"),
            vmem_limit_bytes=vmem_limit),
        cost_estimate=cost,
    )(w, s, t)

    sq_sum = jnp.sum(partial_sums)

    if reduction == "mean":
        loss = sq_sum / jnp.float32(B * C * H * W)
    elif reduction == "sum":
        loss = sq_sum
    else:
        # TODO(synk): reduction='none' needs a full (B,C,H,W) elementwise loss
        # output; the partial-sum kernel only supports 'mean'/'sum'.
        raise NotImplementedError("reduction='none' not supported here")

    return loss * jnp.float32(loss_weight)


def _reference(student_feat, teacher_feat, teacher_attn, loss_weight=1.0):
    """Pure-JAX mirror of the PyTorch forward (MSELoss, reduction='mean')."""
    B, C, H, W = teacher_feat.shape
    attn = teacher_attn.astype(jnp.float32)
    if attn.ndim > teacher_feat.ndim and attn.shape[1] > 1:
        attn = jnp.mean(attn, axis=1, keepdims=True)
    if attn.shape[-2:] != (H, W):
        attn = jax.image.resize(attn, (*attn.shape[:-2], H, W), method="linear")
    amin = jnp.min(attn, axis=(-2, -1), keepdims=True)
    amax = jnp.max(attn, axis=(-2, -1), keepdims=True)
    attn_norm = (attn - amin) / (amax - amin + 1e-6)
    if student_feat.shape[2:] != (H, W):
        student_feat = jax.image.resize(
            student_feat, (*student_feat.shape[:2], H, W), method="linear")
    s_w = student_feat.astype(jnp.float32) * attn_norm
    t_w = teacher_feat.astype(jnp.float32) * attn_norm
    return jnp.mean((s_w - t_w) ** 2) * loss_weight


if __name__ == "__main__":
    # ---- Case 1: small shapes, single attention channel, single tile ----
    k1, k2, k3 = jax.random.split(jax.random.PRNGKey(0), 3)
    B, C, H, W = 2, 4, 16, 16
    student = jax.random.normal(k1, (B, C, H, W), dtype=jnp.float32)
    teacher = jax.random.normal(k2, (B, C, H, W), dtype=jnp.float32)
    attn = jax.random.normal(k3, (B, 1, H, W), dtype=jnp.float32)

    loss = attention_guided_feature_loss(student, teacher, attn, loss_weight=1.0)
    loss = jax.block_until_ready(loss)
    ref = _reference(student, teacher, attn, loss_weight=1.0)
    assert jnp.allclose(loss, ref, rtol=1e-5, atol=1e-6), (loss, ref)

    # ---- Case 2: per-channel attention + forced tiling with masked tail
    #      (HW=400, tile=128 -> 4 tiles, exact 2x2 outer/inner split) ----
    k4, k5, k6 = jax.random.split(jax.random.PRNGKey(1), 3)
    B2, C2, H2, W2 = 2, 8, 20, 20
    student2 = jax.random.normal(k4, (B2, C2, H2, W2), dtype=jnp.float32)
    teacher2 = jax.random.normal(k5, (B2, C2, H2, W2), dtype=jnp.float32)
    attn2 = jax.random.normal(k6, (B2, C2, H2, W2), dtype=jnp.float32)

    loss2 = attention_guided_feature_loss(
        student2, teacher2, attn2, loss_weight=0.5,
        vmem_budget_bytes=48 * 1024)          # forces hw_tile = 128
    loss2 = jax.block_until_ready(loss2)
    ref2 = _reference(student2, teacher2, attn2, loss_weight=0.5)
    assert jnp.allclose(loss2, ref2, rtol=1e-5, atol=1e-6), (loss2, ref2)

    # ---- Case 3: bf16 features (bf16 attention streaming), B=1, odd tile
    #      count (HW=384, tile=128 -> 3 tiles) exercising the ragged split ----
    k7, k8, k9 = jax.random.split(jax.random.PRNGKey(2), 3)
    B3, C3, H3, W3 = 1, 16, 16, 24
    student3 = jax.random.normal(k7, (B3, C3, H3, W3), dtype=jnp.bfloat16)
    teacher3 = jax.random.normal(k8, (B3, C3, H3, W3), dtype=jnp.bfloat16)
    attn3 = jax.random.normal(k9, (B3, 1, H3, W3), dtype=jnp.float32)

    loss3 = attention_guided_feature_loss(
        student3, teacher3, attn3, loss_weight=1.0,
        vmem_budget_bytes=48 * 1024)          # forces hw_tile = 128
    loss3 = jax.block_until_ready(loss3)
    ref3 = _reference(student3, teacher3, attn3, loss_weight=1.0)
    assert jnp.allclose(loss3, ref3, rtol=2e-2, atol=1e-6), (loss3, ref3)

    print("KERNEL_OK")
</pallas_src>

<mosaic_0001>
module attributes {stable_mosaic.version = 11 : i64} {
  func.func @_agfl_kernel(%arg0: i32, %arg1: i32, %arg2: i32, %arg3: memref<1x1x256xf32, #tpu.memory_space<vmem>>, %arg4: memref<1x4x256xf32, #tpu.memory_space<vmem>>, %arg5: memref<1x4x256xf32, #tpu.memory_space<vmem>>, %arg6: memref<1x1x1x256xf32, #tpu.memory_space<vmem>>) attributes {dimension_semantics = [#tpu.dimension_semantics<parallel>, #tpu.dimension_semantics<parallel>, #tpu.dimension_semantics<arbitrary>], iteration_bounds = array<i64: 2, 1, 1>, scalar_prefetch = 0 : i64, scratch_operands = 0 : i64, tpu.core_type = #tpu.core_type<tc>, window_params = [{transform_indices = @transform_0, window_bounds = array<i64: 1, 1, 256>}, {transform_indices = @transform_1, window_bounds = array<i64: 1, 4, 256>}, {transform_indices = @transform_2, window_bounds = array<i64: 1, 4, 256>}, {transform_indices = @transform_3, window_bounds = array<i64: 1, 1, 1, 256>}]} {
    %c0_i32 = arith.constant 0 : i32
    %0 = arith.cmpi eq, %arg2, %c0_i32 : i32
    %1 = arith.extui %0 : i1 to i32
    %c0_i32_0 = arith.constant 0 : i32
    %2 = arith.cmpi ne, %1, %c0_i32_0 : i32
    scf.if %2 {
      %cst_17 = arith.constant 0.000000e+00 : f32
      %19 = vector.broadcast %cst_17 : f32 to vector<1x1x1x256xf32>
      %c0_18 = arith.constant 0 : index
      %c0_19 = arith.constant 0 : index
      %c0_20 = arith.constant 0 : index
      %c0_21 = arith.constant 0 : index
      %20 = vector.load %arg6[%c0_18, %c0_19, %c0_20, %c0_21] : memref<1x1x1x256xf32, #tpu.memory_space<vmem>>, vector<1x1x1x256xf32>
      tpu.vector_store %arg6[%c0_18, %c0_19, %c0_20, %c0_21], %19 {strides = array<i32>} : memref<1x1x1x256xf32, #tpu.memory_space<vmem>>, vector<1x1x1x256xf32>,
    } else {
    }
    %c0 = arith.constant 0 : index
    %c0_1 = arith.constant 0 : index
    %c0_2 = arith.constant 0 : index
    %3 = vector.load %arg4[%c0, %c0_1, %c0_2] : memref<1x4x256xf32, #tpu.memory_space<vmem>>, vector<1x4x256xf32>
    %4 = vector.shape_cast %3 : vector<1x4x256xf32> to vector<4x256xf32>
    %c0_3 = arith.constant 0 : index
    %c0_4 = arith.constant 0 : index
    %c0_5 = arith.constant 0 : index
    %5 = vector.load %arg5[%c0_3, %c0_4, %c0_5] : memref<1x4x256xf32, #tpu.memory_space<vmem>>, vector<1x4x256xf32>
    %6 = vector.shape_cast %5 : vector<1x4x256xf32> to vector<4x256xf32>
    %c0_6 = arith.constant 0 : index
    %c0_7 = arith.constant 0 : index
    %c0_8 = arith.constant 0 : index
    %7 = vector.load %arg3[%c0_6, %c0_7, %c0_8] : memref<1x1x256xf32, #tpu.memory_space<vmem>>, vector<1x1x256xf32>
    %8 = vector.shape_cast %7 : vector<1x1x256xf32> to vector<1x256xf32>
    %9 = arith.mulf %8, %8 : vector<1x256xf32>
    %10 = arith.subf %4, %6 : vector<4x256xf32>
    %11 = arith.mulf %10, %10 : vector<4x256xf32>
    %cst = arith.constant dense<0.000000e+00> : vector<256xf32>
    %12 = vector.multi_reduction <add>, %11, %cst [0] : vector<4x256xf32> to vector<256xf32>
    %13 = vector.shape_cast %12 : vector<256xf32> to vector<1x256xf32>
    %14 = arith.mulf %13, %9 : vector<1x256xf32>
    %15 = vector.shape_cast %14 : vector<1x256xf32> to vector<1x1x1x256xf32>
    %c0_9 = arith.constant 0 : index
    %c0_10 = arith.constant 0 : index
    %c0_11 = arith.constant 0 : index
    %c0_12 = arith.constant 0 : index
    %16 = vector.load %arg6[%c0_9, %c0_10, %c0_11, %c0_12] : memref<1x1x1x256xf32, #tpu.memory_space<vmem>>, vector<1x1x1x256xf32>
    %17 = arith.addf %16, %15 : vector<1x1x1x256xf32>
    %c0_13 = arith.constant 0 : index
    %c0_14 = arith.constant 0 : index
    %c0_15 = arith.constant 0 : index
    %c0_16 = arith.constant 0 : index
    %18 = vector.load %arg6[%c0_13, %c0_14, %c0_15, %c0_16] : memref<1x1x1x256xf32, #tpu.memory_space<vmem>>, vector<1x1x1x256xf32>
    tpu.vector_store %arg6[%c0_13, %c0_14, %c0_15, %c0_16], %17 {strides = array<i32>} : memref<1x1x1x256xf32, #tpu.memory_space<vmem>>, vector<1x1x1x256xf32>,
    return
  }
  func.func @transform_0(%arg0: i32, %arg1: i32, %arg2: i32) -> (i32, i32, i32) {
    %c1_i32 = arith.constant 1 : i32
    %0 = arith.muli %arg1, %c1_i32 : i32
    %1 = arith.addi %0, %arg2 : i32
    %c0_i32 = arith.constant 0 : i32
    %c0_i32_0 = arith.constant 0 : i32
    return %arg0, %c0_i32, %1 : i32, i32, i32
  }
  func.func @transform_1(%arg0: i32, %arg1: i32, %arg2: i32) -> (i32, i32, i32) {
    %c1_i32 = arith.constant 1 : i32
    %0 = arith.muli %arg1, %c1_i32 : i32
    %1 = arith.addi %0, %arg2 : i32
    %c0_i32 = arith.constant 0 : i32
    %c0_i32_0 = arith.constant 0 : i32
    return %arg0, %c0_i32, %1 : i32, i32, i32
  }
  func.func @transform_2(%arg0: i32, %arg1: i32, %arg2: i32) -> (i32, i32, i32) {
    %c1_i32 = arith.constant 1 : i32
    %0 = arith.muli %arg1, %c1_i32 : i32
    %1 = arith.addi %0, %arg2 : i32
    %c0_i32 = arith.constant 0 : i32
    %c0_i32_0 = arith.constant 0 : i32
    return %arg0, %c0_i32, %1 : i32, i32, i32
  }
  func.func @transform_3(%arg0: i32, %arg1: i32, %arg2: i32) -> (i32, i32, i32, i32) {
    %c0_i32 = arith.constant 0 : i32
    %c0_i32_0 = arith.constant 0 : i32
    %c0_i32_1 = arith.constant 0 : i32
    return %arg0, %arg1, %c0_i32, %c0_i32_0 : i32, i32, i32, i32
  }
}

</mosaic_0001>

<bundles_post_ra>
// kernel: tpu_custom_call.1
= control target key start
LH: loop header
LB: loop body
LE: loop exit
PB: predicated region body
PF: predicated region fallthrough
CT: control target
= control target key end

     0   :  { %s1111_s0 = inlined_call_operand.hbm [shape: f32[2,1,256], index: 0, kind: input, shape index: {}]   ;;  %s1112_s1 = inlined_call_operand.hbm [shape: f32[2,4,256], index: 1, kind: input, shape index: {}]   ;;  %s1113_s2 = inlined_call_operand.hbm [shape: f32[2,4,256], index: 2, kind: input, shape index: {}]   ;;  %s1114_s3 = inlined_call_operand.hbm [shape: f32[2,1,1,256], index: 3, kind: output, shape index: {}]  }
   0x1   :  { %1120 = sst [smem:[#allocation15_spill]] %s1112_s1 }
   0x2   :  { %8 = vsyncpa [#allocation3], 0 }
   0x3   :  { %10 = vsyncpa [#allocation3 + $0x1], 0 }
   0x4   :  { %11 = vsyncpa [#allocation6], 0 }
   0x5   :  { %13 = vsyncpa [#allocation6 + $0x1], 0 }
   0x6   :  { %14 = vsyncpa [#allocation4], 0 }
   0x7   :  { %16 = vsyncpa [#allocation4 + $0x1], 0  ;;  %s840_s12 = smov 0   ;;  %s842_s13 = smov 0  }
   0x8   :  { %s844_s14 = smov 0   ;;  %s846_s15 = smov 0  }
   0x9   :  { %s848_s16 = smov 0   ;;  %s850_s17 = smov 0  }
   0xa LB: > { %1121 = sst [smem:[#allocation12_spill]] %s808_s16  ;;  %s871_s18 = sadd.s32 4294967295, %s812_s17   ;;  %s812_s17 = sphi %s850_s17, %s22_s17   ;;  %s808_s16 = sphi %s848_s16, %s1142_s16   ;;  %s804_s15 = sphi %s846_s15, %s1141_s15   ;;  %s800_s14 = sphi %s844_s14, %s1145_s14   ;;  %s796_s13 = sphi %s842_s13, %s1144_s13   ;;  %s792_s12 = sphi %s840_s12, %s1143_s12  }
   0xb   : > { %s536_s19 = sadd.s32 4294967294, %s812_s17   ;;  %s41_s20 = sadd.s32 1, %s808_s16 }
   0xc   : > { %s52_s21 = sadd.s32 1, %s800_s14  ;;  %p43_p0 = scmp.ge.s32.totalorder %s41_s20, 2 }
   0xd   : > { %p59_p1 = scmp.ne.s32.totalorder %s800_s14, %s796_s13  ;;  %p60_p2 = scmp.eq.s32.totalorder %s812_s17, 0 }
   0xe   : > { %p65_p3 = scmp.ne.s32.totalorder %s796_s13, %s792_s12  ;;  %s1147_s20 = smov (%p43_p0, %s41_s20), 0 }
   0xf   : > { %1122 = sst [smem:[#allocation13_spill]] %s1147_s20  ;;  %p883_p4 = por %p60_p2, %p59_p1 }
  0x10   : > { %p66_p5 = scmp.eq.s32.totalorder %s871_s18, 0  ;;  %s47_s23 = ssub.s32 %s808_s16, %s1147_s20 }
  0x11   : > { %p151_p6 = scmp.eq.s32.totalorder %s871_s18, 1  ;;  %p50_p7 = scmp.eq.s32.totalorder %s47_s23, 0 }
  0x12   : > { %p891_p8 = por %p66_p5, %p65_p3  ;;  %p157_p10 = scmp.eq.s32.totalorder %s536_s19, 1 }
  0x13   : > { %p895_p9 = por %p151_p6, %p59_p1  ;;  %p584_p13 = scmp.lt.s32.totalorder %s812_s17, 2 }
  0x14   : > { %s1124_s24 = scalar_select %p891_p8, 1, 0 }
  0x15   : > { %s1125_s25 = scalar_select %p895_p9, 1, 0 }
  0x16   : > { %s900_s26 = scalar_select %p50_p7, %s800_s14, %s52_s21  }
  0x17   : > { %p902_p11 = por %p157_p10, %p65_p3  ;;  %s909_s28 = sand.u32 1, %s800_s14  }
  0x18   : > { %1126 = sst [smem:[#allocation14_spill]] %s900_s26  ;;  %s199_s29 = sand.u32 1, %s812_s17  }
  0x19   : > { %s1127_s27 = scalar_select %p902_p11, 1, 0 }
  0x1a   : > { %s1115_s30 = sshll.u32 %s909_s28, 3  ;;  %p915_p0 = pnand %p584_p13, %p883_p4 }
  0x1b   : > { %s559_s5 = sshll.u32 %s808_s16, 7  ;;  %s1129_s1 = sld [smem:[#allocation15_spill]] }
  0x1c   : > { %s203_s9 = scalar_lea.vmem [#allocation5], %s1115_s30  ;;  %s932_s21 = scalar_lea.hbm %s1113_s2, %s559_s5 }
  0x1d   : > { %s214_s10 = sshll.u32 %s203_s9, 4  ;;  %s934_s22 = scalar_lea.sflag [#allocation6], %s199_s29  ;;  %s927_s10 = int_to_ptr.vmem [resolvable:$true] %s214_s10 }
  0x1e   : > { %p940_p2 = pneg %p915_p0 }
  0x21   : > { %s923_s8 = scalar_lea.hbm %s1129_s1, %s559_s5  ;;  %s641_s30 = scalar_lea.hbm %s1129_s1, 256 }
  0x22   : > { %s636_s23 = scalar_lea.hbm %s923_s8, 128  ;;  %p642_p5 = scmp.lt.u32.totalorder %s923_s8, %s1129_s1 }
  0x23   : > { %p637_p1 = scmp.ne.s32.totalorder %s923_s8, %s636_s23  ;;  %p643_p6 = scmp.lt.u32.totalorder %s641_s30, %s636_s23 }
  0x24   : > { %p645_p10 = scmp.lt.u32.totalorder %s636_s23, %s923_s8 }
  0x25   : > { %p639_p3 = pnand %p940_p2, %p637_p1  ;;  %p644_p7 = por %p643_p6, %p642_p5 }
  0x27   : > { %p640_p4 = pneg %p639_p3  ;;  %p646_p13 = por %p645_p10, %p644_p7 }
  0x29   : > { %p647_p12 = pnand %p646_p13, %p640_p4 }
  0x2b   : > { %650 = shalt.err (!%p647_p12)
}
  0x2c   : > { %s651_s29 = scalar_lea.vmem %s927_s10, 128  ;;  %s814_s19 = smov [#allocation5]  }
  0x2d   : > { %p652_p1 = scmp.ne.s32.totalorder %s927_s10, %s651_s29  ;;  %s656_s7 = sshll.u32 %s814_s19, 4  ;;  %s657_s7 = int_to_ptr.vmem [resolvable:$false] %s656_s7 }
  0x2e   : > { %s658_s9 = scalar_lea.vmem %s657_s7, 256  ;;  %p659_p9 = scmp.lt.s32.totalorder %s927_s10, %s657_s7 }
  0x2f   : > { %p654_p3 = pnand %p652_p1, %p940_p2  ;;  %p660_p8 = scmp.lt.s32.totalorder %s658_s9, %s651_s29 }
  0x31   : > { %p655_p11 = pneg %p654_p3  ;;  %p661_p5 = por %p660_p8, %p659_p9 }
  0x33   : > { %p662_p6 = pnand %p661_p5, %p655_p11 }
  0x35   : > { %665 = shalt.err (!%p662_p6)
}
  0x36   : > { %576 = dma.hbm_to_vmem [thread:$0]  (!%p915_p0), %s923_s8, 128, %s927_s10, %s934_s22  }
  0x37   : > { %p548_p12 = scmp.ge.s32.totalorder %s812_s17, 1  ;;  %p241_p4 = scmp.lt.s32.totalorder %s812_s17, 3 }
  0x38   : > { %s539_s23 = sshll.u32 %s909_s28, 1  ;;  %s558_s11 = sshll.u32 %s808_s16, 5 }
  0x39   : > { %p966_p7 = pnand %p548_p12, %p241_p4  ;;  %s975_s19 = scalar_lea.hbm %s1111_s0, %s558_s11 }
  0x3a   : > { %s181_s7 = scalar_lea.vmem [#allocation2], %s539_s23  ;;  %s1132_s10 = sshll.u32 %s909_s28, 3 }
  0x3b   : > { %s1131_s30 = scalar_select %p966_p7, 1, 0 }
  0x3c   : > { %s192_s8 = sshll.u32 %s181_s7, 4  ;;  %s225_s9 = scalar_lea.vmem [#allocation7], %s1132_s10  ;;  %s979_s8 = int_to_ptr.vmem [resolvable:$true] %s192_s8 }
  0x3d   : > { %s236_s1 = sshll.u32 %s225_s9, 4  ;;  %s178_s20 = scalar_lea.sflag [#allocation3], %s909_s28  ;;  %s981_s1 = int_to_ptr.vmem [resolvable:$true] %s236_s1 }
  0x3e   : > { %s666_s16 = scalar_lea.hbm %s975_s19, 32  ;;  %s671_s29 = scalar_lea.hbm %s1111_s0, 64 }
  0x3f   : > { %p667_p8 = scmp.ne.s32.totalorder %s975_s19, %s666_s16  ;;  %p672_p10 = scmp.lt.u32.totalorder %s975_s19, %s1111_s0 }
  0x40   : > { %p673_p13 = scmp.lt.u32.totalorder %s671_s29, %s666_s16  ;;  %p675_p3 = scmp.lt.u32.totalorder %s666_s16, %s975_s19 }
  0x41   : > { %p669_p9 = pnand %p667_p8, %p940_p2 }
  0x42   : > { %p674_p1 = por %p673_p13, %p672_p10 }
  0x43   : > { %p670_p11 = pneg %p669_p9 }
  0x44   : > { %p676_p5 = por %p675_p3, %p674_p1 }
  0x46   : > { %p677_p6 = pnand %p676_p5, %p670_p11 }
  0x48   : > { %680 = shalt.err (!%p677_p6)
}
  0x49   : > { %s681_s28 = scalar_lea.vmem %s979_s8, 32  ;;  %s815_s7 = smov [#allocation2]  }
  0x4a   : > { %p682_p12 = scmp.ne.s32.totalorder %s979_s8, %s681_s28  ;;  %s686_s10 = sshll.u32 %s815_s7, 4  ;;  %s687_s10 = int_to_ptr.vmem [resolvable:$false] %s686_s10 }
  0x4b   : > { %s688_s26 = scalar_lea.vmem %s687_s10, 64  ;;  %p689_p9 = scmp.lt.s32.totalorder %s979_s8, %s687_s10 }
  0x4c   : > { %p684_p4 = pnand %p682_p12, %p940_p2  ;;  %p690_p7 = scmp.lt.s32.totalorder %s688_s26, %s681_s28 }
  0x4e   : > { %p685_p8 = pneg %p684_p4  ;;  %p691_p10 = por %p690_p7, %p689_p9 }
  0x50   : > { %p692_p13 = pnand %p691_p10, %p685_p8 }
  0x52   : > { %695 = shalt.err (!%p692_p13)
}
  0x53   : > { %573 = dma.hbm_to_vmem [thread:$0]  (!%p915_p0), %s975_s19, 32, %s979_s8, %s178_s20  }
  0x54   : > { %s696_s16 = scalar_lea.hbm %s932_s21, 128  ;;  %s701_s5 = scalar_lea.hbm %s1113_s2, 256 }
  0x55   : > { %p697_p11 = scmp.ne.s32.totalorder %s932_s21, %s696_s16  ;;  %p702_p7 = scmp.lt.u32.totalorder %s932_s21, %s1113_s2 }
  0x56   : > { %p703_p5 = scmp.lt.u32.totalorder %s701_s5, %s696_s16  ;;  %p705_p12 = scmp.lt.u32.totalorder %s696_s16, %s932_s21 }
  0x57   : > { %p699_p1 = pnand %p697_p11, %p940_p2 }
  0x58   : > { %p704_p6 = por %p703_p5, %p702_p7 }
  0x59   : > { %p700_p3 = pneg %p699_p1 }
  0x5a   : > { %p706_p4 = por %p705_p12, %p704_p6 }
  0x5c   : > { %p707_p8 = pnand %p706_p4, %p700_p3 }
  0x5e   : > { %710 = shalt.err (!%p707_p8)
}
  0x5f   : > { %s711_s20 = scalar_lea.vmem %s981_s1, 128  ;;  %s816_s19 = smov [#allocation7]  }
  0x60   : > { %p712_p9 = scmp.ne.s32.totalorder %s981_s1, %s711_s20  ;;  %s716_s8 = sshll.u32 %s816_s19, 4  ;;  %s717_s8 = int_to_ptr.vmem [resolvable:$false] %s716_s8 }
  0x61   : > { %s718_s28 = scalar_lea.vmem %s717_s8, 256  ;;  %p719_p11 = scmp.lt.s32.totalorder %s981_s1, %s717_s8 }
  0x62   : > { %p714_p10 = pnand %p712_p9, %p940_p2  ;;  %p720_p1 = scmp.lt.s32.totalorder %s718_s28, %s711_s20 }
  0x64   : > { %p715_p13 = pneg %p714_p10  ;;  %p721_p7 = por %p720_p1, %p719_p11 }
  0x66   : > { %p722_p5 = pnand %p721_p7, %p715_p13 }
  0x68   : > { %725 = shalt.err (!%p722_p5)
}
  0x69   : > { %579 = dma.hbm_to_vmem [thread:$0]  (!%p915_p0), %s932_s21, 128, %s981_s1, %s934_s22  }
  0x6a   : > { %p1133_p3 = scmp.ne.s32.totalorder %s1131_s30, 0 }
  0x6b   : > { %s1030_s6 = sand.u32 (!%p1133_p3), 1, %s796_s13   ;;  %p1134_p2 = scmp.ne.s32.totalorder (!%p1133_p3), %s1124_s24, 0 }
  0x6c   : > { %245 = sbr.rel (%p1133_p3) target bundleno = 164 (0xa4), region = 32  ;;  %s549_s7 = sshll.u32 (!%p1133_p3), %s1030_s6, 1 }
  0x6d   : > { %s248_s10 = scalar_lea.sflag (!%p1133_p3), [#allocation3], %s1030_s6  ;;  %s251_s26 = scalar_lea.vmem (!%p1133_p3), [#allocation2], %s549_s7 }
  0x73   : > { %779 = dma.done.wait (%p1134_p2), %s248_s10, 32  }
  0x74   : > { %781 = vsyncadd (%p1134_p2), %s248_s10, 4294967264  ;;  %s256_s1 = sand.u32 1, %s871_s18   ;;  %s550_s4 = sshll.u32 %s1030_s6, 3 }
  0x75   : > { %s257_s21 = scalar_lea.sflag [#allocation6], %s256_s1  ;;  %s260_s22 = scalar_lea.vmem [#allocation5], %s550_s4 }
  0x76   : > { %783 = dma.done.wait (%p1134_p2), %s257_s21, 256  }
  0x77   : > { %785 = vsyncadd (%p1134_p2), %s257_s21, 4294967040  ;;  %v312_v0 = vlaneseq  ;;  %s1048_s30 = scalar_lea.vmem [#allocation8], %s549_s7  ;;  %v817_v2 = vmov 0.0   ;;  %v317_v3 = vld [vmem:[%s260_s22] sm:$0xff]  ;;  %s269_s18 = scalar_lea.vmem [#allocation7], %s550_s4  ;;  %vm326_vm1 = vcmask 1043456  }
  0x78   : > { %v318_v4 = vld [vmem:[%s269_s18] sm:$0xff]  ;;  %v818_v22 = vmov 1966171168   ;;  %s561_s24 = sshll.u32 %s804_s15, 5  ;;  %s396_s16 = sshll.u32 %s1048_s30, 4  ;;  %s1061_s16 = int_to_ptr.vmem [resolvable:$true] %s396_s16 }
  0x79   : > { %vm1044_vm0 = vcmp.lt.s32.totalorder %v312_v0, 256  ;;  %v321_v5 = vsub.f32 %v317_v3, %v318_v4  ;;  %v343_v10 = vshrl.u32 %v312_v0, 7  ;;  %v319_v11 = vld [vmem:[%s251_s26] sm:$0x3]  ;;  %v359_v23 = vunpack.c.l.s4 %v818_v22  ;;  %s1059_s5 = scalar_lea.hbm %s1114_s3, %s561_s24  ;;  %s380_s29 = scalar_lea.sflag [#allocation4], %s1030_s6 }
  0x7a   : > { %316 = vst.msk [vmem:[%s1048_s30] sm:$0x3] %vm1044_vm0, %v817_v2  ;;  %v320_v15 = vmul.f32 %v319_v11, %v319_v11  ;;  %s726_s23 = scalar_lea.vmem %s1061_s16, 32  ;;  %p1137_p6 = scmp.ne.s32.totalorder %s1125_s25, 0 }
  0x7b   : > { %v322_v6 = vmul.f32 %v321_v5, %v321_v5  ;;  %v344_v18 = vsub.s32 0, %v343_v10  ;;  %v348_v21 = vsub.s32 1, %v343_v10  ;;  %v360_v30 = vunpack.c.0.s8 %v359_v23  ;;  %p727_p0 = scmp.ne.s32.totalorder %s1061_s16, %s726_s23  ;;  %s819_s15 = smov [#allocation8]  }
  0x7c   : > { %s730_s20 = sshll.u32 %s819_s15, 4  ;;  %s731_s20 = int_to_ptr.vmem [resolvable:$false] %s730_s20 }
  0x7d   : > { %v324_v7 = vcombine.high %v322_v6, %v322_v6  ;;  %v327_v8 = vsel %vm326_vm1, %v322_v6, 0.0  ;;  %v345_v26 = vrot.slane %v320_v15, %v344_v18  ;;  %v349_v29 = vrot.slane %v320_v15, %v348_v21  ;;  %p728_p12 = pnand %p727_p0, %p1137_p6  ;;  %s732_s19 = scalar_lea.vmem %s731_s20, 64 }
  0x7e   : > { %v328_v9 = vrot.slane %v327_v8, 4  ;;  %v363_v34 = vsub.s32 %v360_v30, %v343_v10  ;;  %p733_p8 = scmp.lt.s32.totalorder %s1061_s16, %s731_s20  ;;  %p734_p9 = scmp.lt.s32.totalorder %s732_s19, %s726_s23 }
  0x7f   : > { %v334_v12 = vsel %vm326_vm1, %v324_v7, 0.0  ;;  %p729_p4 = pneg %p728_p12 }
  0x80   : > { %v329_v13 = vadd.f32 %v328_v9, %v327_v8  ;;  %v335_v14 = vrot.slane %v334_v12, 4  ;;  %p735_p10 = por %p734_p9, %p733_p8 }
  0x81   : > { %v354_v37 = vld [vmem:[%s1048_s30] sm:$0x3] }
  0x82   : > { %v330_v16 = vrot.slane %v329_v13, 2  ;;  %v336_v17 = vadd.f32 %v335_v14, %v334_v12  ;;  %p736_p13 = pnand %p735_p10, %p729_p4 }
  0x84   : > { %v331_v19 = vadd.f32 %v330_v16, %v329_v13  ;;  %v337_v20 = vrot.slane %v336_v17, 2 }
  0x86   : > { %v332_v24 = vrot.slane %v331_v19, 1  ;;  %v338_v25 = vadd.f32 %v337_v20, %v336_v17 }
  0x88   : > { %v333_v27 = vadd.f32 %v332_v24, %v331_v19  ;;  %v339_v28 = vrot.slane %v338_v25, 1 }
  0x8a   : > { %v340_v31 = vadd.f32 %v339_v28, %v338_v25  ;;  %v352_v32 = vmul.f32 %v345_v26, %v333_v27 }
  0x8c   : > { %v353_v33 = vmul.f32 %v349_v29, %v340_v31 }
  0x8e   : > { %v357_v35 = vcombine.low %v352_v32, %v353_v33 }
  0x90   : > { %v364_v36 = vrot.slane %v357_v35, %v363_v34 }
  0x92   : > { %v371_v38 = vrot.slane %v364_v36, %v363_v34 }
  0x94   : > { %v373_v39 = vadd.f32 %v371_v38, %v354_v37 }
  0x96   : > { %378 = vst.msk [vmem:[%s1048_s30] sm:$0x3] %vm1044_vm0, %v373_v39 }
  0x97   : > { %739 = shalt.err (!%p736_p13)
}
  0x98   : > { %s740_s8 = scalar_lea.hbm %s1059_s5, 32  ;;  %s744_s7 = scalar_lea.hbm %s1114_s3, 64 }
  0x99   : > { %p741_p11 = scmp.ne.s32.totalorder %s1059_s5, %s740_s8  ;;  %p745_p5 = scmp.lt.u32.totalorder %s1059_s5, %s1114_s3 }
  0x9a   : > { %p746_p3 = scmp.lt.u32.totalorder %s744_s7, %s740_s8  ;;  %p748_p0 = scmp.lt.u32.totalorder %s740_s8, %s1059_s5 }
  0x9b   : > { %p742_p1 = pnand %p741_p11, %p1137_p6 }
  0x9c   : > { %p747_p2 = por %p746_p3, %p745_p5 }
  0x9d   : > { %p743_p7 = pneg %p742_p1 }
  0x9e   : > { %p749_p12 = por %p748_p0, %p747_p2 }
  0xa0   : > { %p750_p4 = pnand %p749_p12, %p743_p7 }
  0xa2   : > { %753 = shalt.err (!%p750_p4)
}
  0xa3   : > { %568 = dma.vmem_to_hbm [thread:$0]  (%p1137_p6), %s1061_s16, 32, %s1059_s5, %s380_s29  }
  0xa4 PF: > { %s408_s1 = sand.u32 1, %s792_s12   ;;  %p1138_p8 = scmp.ne.s32.totalorder %s1127_s27, 0 }
  0xa5   : > { %p1139_p9 = scmp.ge.s32.totalorder %s812_s17, 2  ;;  %s409_s4 = scalar_lea.sflag [#allocation4], %s408_s1 }
  0xa7   : > { %p581_p10 = pnand %p1139_p9, %p1138_p8 }
  0xa9   : > { %787 = dma.done.wait (!%p581_p10), %s409_s4, 32  }
  0xaa   : > { %789 = vsyncadd (!%p581_p10), %s409_s4, 4294967264  ;;  %s22_s17 = sadd.s32 1, %s812_s17   ;;  %s1140_s25 = sld [smem:[#allocation14_spill]] }
  0xab   : > { %p19_p13 = scmp.ge.s32.totalorder %s22_s17, 4   ;;  %s1141_s15 = sld [smem:[#allocation12_spill]] }
  0xac   : > { %s1142_s16 = sld [smem:[#allocation13_spill]]  ;;  %s1143_s12 = smov %s796_s13 }
  0xad   : > { %s1144_s13 = smov %s800_s14  ;;  %21 = sbr.rel (!%p19_p13) target bundleno = 10 (0xa), region = 105 }
  0xb0   : > { %s1145_s14 = smov %s1140_s25 }
  0xb4   :  { %414 = vsyncpa [#allocation3], 1 }
  0xb5   :  { %416 = vsyncpa [#allocation3 + $0x1], 1 }
  0xb6   :  { %417 = vsyncpa [#allocation6], 1 }
  0xb7   :  { %419 = vsyncpa [#allocation6 + $0x1], 1 }
  0xb8   :  { %420 = vsyncpa [#allocation4], 1 }
  0xb9   :  { %422 = vsyncpa [#allocation4 + $0x1], 1 }

</bundles_post_ra>
